<compile_context>
chip_gen: v6e
topology: v6e:2x2x1
jax: 0.10.0
libtpu: 0.0.40
codegen_flags: <defaults>
</compile_context>

<pallas_src>
import functools

import jax
import jax.numpy as jnp
from jax.experimental import pallas as pl
from jax.experimental.pallas import tpu as pltpu


def _round_up(x, m):
    return ((x + m - 1) // m) * m


def _cw_attention_kernel(x_ref, w1_ref, b1_ref, w2_ref, b2_ref, v_ref, o_ref,
                         *, w_len, c, rep):
    # x_ref block: (TBH, L, 128) lane-dense view of (TBH, W, C) rows, where
    # each 128-lane row holds `rep` consecutive w-slices of C channels.
    x = x_ref[...]                                           # (TBH, L, 128) f32

    # AvgPool2d((1, W)): mean over W.  Sum the L sublane rows (XLU), then fold
    # the 128 lanes (rep w-slices of C channels each) back down to C.
    s = jnp.sum(x, axis=1)                                   # (TBH, 128)
    fm = s[:, 0:c]
    for k in range(1, rep):                                  # static, rep = 128 // C
        fm = fm + s[:, k * c:(k + 1) * c]
    fm = fm * (1.0 / w_len)                                  # (TBH, C)

    # fc: Linear(C -> r), Tanh, Linear(r -> C), batched over the TBH rows (MXU).
    h = jnp.tanh(
        jnp.dot(fm, w1_ref[...], preferred_element_type=jnp.float32) + b1_ref[...]
    )                                                        # (TBH, r)
    logits = (
        jnp.dot(h, w2_ref[...], preferred_element_type=jnp.float32) + b2_ref[...]
    )                                                        # (TBH, C)

    # Softmax over the channel axis (PyTorch dim=3), numerically stable.
    m = jnp.max(logits, axis=-1, keepdims=True)
    e = jnp.exp(logits - m)
    denom = jnp.sum(e, axis=-1, keepdims=True)
    v = e * pl.reciprocal(denom, approx=True)                # (TBH, C)

    v_ref[...] = v

    # Broadcast multiply in the lane-dense layout: tile v along lanes so that
    # lane l gets v[l % C] (row-major packing of w-slices), then broadcast
    # over the L sublane rows.
    v_tiled = jnp.tile(v, (1, rep))                          # (TBH, 128)
    o_ref[...] = x * v_tiled[:, None, :]


def channel_wise_attention_forward(x, w1, b1, w2, b2, *, tbh=128):
    """Channel-wise attention forward.

    x:  [B, H, W, C] float32 (NHWC, as the PyTorch forward receives it).
    w1: [C, r], b1: [r]   -- NOTE: transposed nn.Linear(C, r) weight.
    w2: [r, C], b2: [C]   -- NOTE: transposed nn.Linear(r, C) weight.
    Returns (v [B*H, C], out [B, H, W, C]).
    """
    B, H, W, C = x.shape
    r = w1.shape[1]
    BH = B * H

    lanes = 128
    assert (W * C) % lanes == 0, "W*C must be a multiple of 128 for lane-dense layout"
    assert lanes % C == 0, "C must divide 128 for lane-dense layout"
    L = (W * C) // lanes          # lane-dense rows per (b, h)
    rep = lanes // C              # w-slices packed per 128-lane row

    # Lane-dense view: (BH, W, C) -> (BH, L, 128) (pure row-major reshape).
    xl = x.reshape(BH, L, lanes)

    # Pick the number of (b, h) rows per grid step: as large as possible while
    # the double-buffered x + out tiles stay inside a ~28 MiB VMEM budget
    # (safe on v5e/v6e scoped VMEM and on v7x's 64 MiB physical VMEM).
    bytes_per_row = L * lanes * 4                       # one lane-dense row, f32
    vmem_budget = 28 * 1024 * 1024
    max_rows = max(8, (vmem_budget // (4 * bytes_per_row)) // 8 * 8)
    TBH = min(tbh, max_rows, _round_up(BH, 8))

    # Zero-pad the ragged tail of (b, h) rows.  Padded rows give finite softmax
    # logits (no NaNs) and x == 0 so out == 0; they are sliced off below.
    BH_pad = _round_up(BH, TBH)
    if BH_pad != BH:
        xl = jnp.pad(xl, ((0, BH_pad - BH), (0, 0), (0, 0)))

    b1_2d = b1.reshape(1, r)
    b2_2d = b2.reshape(1, C)

    kernel = functools.partial(_cw_attention_kernel, w_len=W, c=C, rep=rep)

    v_pad, out_pad = pl.pallas_call(
        kernel,
        out_shape=(
            jax.ShapeDtypeStruct((BH_pad, C), jnp.float32),
            jax.ShapeDtypeStruct((BH_pad, L, lanes), jnp.float32),
        ),
        grid_spec=pltpu.PrefetchScalarGridSpec(
            num_scalar_prefetch=0,
            grid=(BH_pad // TBH,),
            in_specs=[
                pl.BlockSpec((TBH, L, lanes), lambda i: (i, 0, 0)),  # x rows (lane-dense)
                pl.BlockSpec((C, r), lambda i: (0, 0)),              # W1 (full, resident)
                pl.BlockSpec((1, r), lambda i: (0, 0)),              # b1
                pl.BlockSpec((r, C), lambda i: (0, 0)),              # W2 (full, resident)
                pl.BlockSpec((1, C), lambda i: (0, 0)),              # b2
            ],
            out_specs=[
                pl.BlockSpec((TBH, C), lambda i: (i, 0)),            # v (batched)
                pl.BlockSpec((TBH, L, lanes), lambda i: (i, 0, 0)),  # attended fm
            ],
        ),
        compiler_params=pltpu.CompilerParams(
            dimension_semantics=("parallel",),          # megacore sharding on v7x
            vmem_limit_bytes=32 * 1024 * 1024,          # covers the 28 MiB tile budget
        ),
    )(xl, w1, b1_2d, w2, b2_2d)

    v = v_pad[:BH]                                # matches torch: v.reshape(-1, C)
    out = out_pad[:BH].reshape(B, H, W, C)        # matches torch: x * vr
    return v, out


def _reference_forward(x, w1, b1, w2, b2):
    # Pure-JAX reference mirroring the PyTorch forward (H == 1 usage).
    B, H, W, C = x.shape
    fm = jnp.mean(x, axis=2)                                # (B, H, C)  AvgPool2d((1, W))
    hgt = jnp.tanh(fm @ w1 + b1)                            # (B, H, r)
    logits = hgt @ w2 + b2                                  # (B, H, C)
    v = jax.nn.softmax(logits, axis=-1)                     # (B, H, C)
    out = x * v[:, :, None, :]                              # (B, H, W, C)
    return v.reshape(-1, C), out


if __name__ == "__main__":
    # Module hyper-params (W = 384 is forced by the hard-coded AvgPool2d((1, 384));
    # H = 1 is the only shape-consistent use of the torch vr reshape).
    B, H, W, C, R = 2, 1, 384, 32, 8

    key = jax.random.PRNGKey(0)
    kx, k1, k2, k3, k4 = jax.random.split(key, 5)

    x = jax.random.normal(kx, (B, H, W, C), dtype=jnp.float32)

    # nn.Linear stores weight as (out_features, in_features); the wrapper takes
    # them already transposed: w1 -> (C, r), w2 -> (r, C).
    w1 = jax.random.normal(k1, (C, R), dtype=jnp.float32) * 0.1
    b1 = jax.random.normal(k2, (R,), dtype=jnp.float32) * 0.1
    w2 = jax.random.normal(k3, (R, C), dtype=jnp.float32) * 0.1
    b2 = jax.random.normal(k4, (C,), dtype=jnp.float32) * 0.1

    v, out = channel_wise_attention_forward(x, w1, b1, w2, b2)
    jax.block_until_ready((v, out))

    v_ref, out_ref = _reference_forward(x, w1, b1, w2, b2)
    assert v.shape == (B * H, C) and out.shape == (B, H, W, C)
    assert jnp.allclose(v, v_ref, atol=2e-3, rtol=2e-3), float(jnp.max(jnp.abs(v - v_ref)))
    assert jnp.allclose(out, out_ref, atol=2e-3, rtol=2e-3), float(jnp.max(jnp.abs(out - out_ref)))

    print("KERNEL_OK")
</pallas_src>

<mosaic_0001>
module attributes {stable_mosaic.version = 11 : i64} {
  func.func @_cw_attention_kernel(%arg0: i32, %arg1: memref<8x96x128xf32, #tpu.memory_space<vmem>>, %arg2: memref<32x8xf32, #tpu.memory_space<vmem>>, %arg3: memref<1x8xf32, #tpu.memory_space<vmem>>, %arg4: memref<8x32xf32, #tpu.memory_space<vmem>>, %arg5: memref<1x32xf32, #tpu.memory_space<vmem>>, %arg6: memref<8x32xf32, #tpu.memory_space<vmem>>, %arg7: memref<8x96x128xf32, #tpu.memory_space<vmem>>) attributes {dimension_semantics = [#tpu.dimension_semantics<parallel>], iteration_bounds = array<i64: 1>, scalar_prefetch = 0 : i64, scratch_operands = 0 : i64, tpu.core_type = #tpu.core_type<tc>, window_params = [{transform_indices = @transform_0, window_bounds = array<i64: 8, 96, 128>}, {pipeline_mode = #tpu.pipeline_mode<synchronous>, transform_indices = @transform_1, window_bounds = array<i64: 32, 8>}, {pipeline_mode = #tpu.pipeline_mode<synchronous>, transform_indices = @transform_2, window_bounds = array<i64: 1, 8>}, {pipeline_mode = #tpu.pipeline_mode<synchronous>, transform_indices = @transform_3, window_bounds = array<i64: 8, 32>}, {pipeline_mode = #tpu.pipeline_mode<synchronous>, transform_indices = @transform_4, window_bounds = array<i64: 1, 32>}, {transform_indices = @transform_5, window_bounds = array<i64: 8, 32>}, {transform_indices = @transform_6, window_bounds = array<i64: 8, 96, 128>}]} {
    %c0 = arith.constant 0 : index
    %c0_0 = arith.constant 0 : index
    %c0_1 = arith.constant 0 : index
    %0 = vector.load %arg1[%c0, %c0_0, %c0_1] : memref<8x96x128xf32, #tpu.memory_space<vmem>>, vector<8x96x128xf32>
    %cst = arith.constant dense<0.000000e+00> : vector<8x128xf32>
    %1 = vector.multi_reduction <add>, %0, %cst [1] : vector<8x96x128xf32> to vector<8x128xf32>
    %2 = vector.extract_strided_slice %1 {offsets = [0, 0], sizes = [8, 32], strides = [1, 1]} : vector<8x128xf32> to vector<8x32xf32>
    %3 = vector.extract_strided_slice %1 {offsets = [0, 32], sizes = [8, 32], strides = [1, 1]} : vector<8x128xf32> to vector<8x32xf32>
    %4 = arith.addf %2, %3 : vector<8x32xf32>
    %5 = vector.extract_strided_slice %1 {offsets = [0, 64], sizes = [8, 32], strides = [1, 1]} : vector<8x128xf32> to vector<8x32xf32>
    %6 = arith.addf %4, %5 : vector<8x32xf32>
    %7 = vector.extract_strided_slice %1 {offsets = [0, 96], sizes = [8, 32], strides = [1, 1]} : vector<8x128xf32> to vector<8x32xf32>
    %8 = arith.addf %6, %7 : vector<8x32xf32>
    %cst_2 = arith.constant 0.00260416674 : f32
    %9 = vector.broadcast %cst_2 : f32 to vector<8x32xf32>
    %10 = arith.mulf %8, %9 : vector<8x32xf32>
    %c0_3 = arith.constant 0 : index
    %c0_4 = arith.constant 0 : index
    %11 = vector.load %arg2[%c0_3, %c0_4] : memref<32x8xf32, #tpu.memory_space<vmem>>, vector<32x8xf32>
    %cst_5 = arith.constant dense<0.000000e+00> : vector<8x8xf32>
    %12 = tpu.matmul %10, %11, %cst_5 {dimension_numbers = #tpu.dot_dimension_numbers<[1], [0], [0], [1], [0, 0, 1, 1], [], []>} : vector<8x32xf32>, vector<32x8xf32>, vector<8x8xf32> -> vector<8x8xf32>
    %c0_6 = arith.constant 0 : index
    %c0_7 = arith.constant 0 : index
    %13 = vector.load %arg3[%c0_6, %c0_7] : memref<1x8xf32, #tpu.memory_space<vmem>>, vector<1x8xf32>
    %14 = vector.broadcast %13 : vector<1x8xf32> to vector<8x8xf32>
    %15 = arith.addf %12, %14 : vector<8x8xf32>
    %16 = math.tanh %15 : vector<8x8xf32>
    %c0_8 = arith.constant 0 : index
    %c0_9 = arith.constant 0 : index
    %17 = vector.load %arg4[%c0_8, %c0_9] : memref<8x32xf32, #tpu.memory_space<vmem>>, vector<8x32xf32>
    %cst_10 = arith.constant dense<0.000000e+00> : vector<8x32xf32>
    %18 = tpu.matmul %16, %17, %cst_10 {dimension_numbers = #tpu.dot_dimension_numbers<[1], [0], [0], [1], [0, 0, 1, 1], [], []>} : vector<8x8xf32>, vector<8x32xf32>, vector<8x32xf32> -> vector<8x32xf32>
    %c0_11 = arith.constant 0 : index
    %c0_12 = arith.constant 0 : index
    %19 = vector.load %arg5[%c0_11, %c0_12] : memref<1x32xf32, #tpu.memory_space<vmem>>, vector<1x32xf32>
    %20 = vector.broadcast %19 : vector<1x32xf32> to vector<8x32xf32>
    %21 = arith.addf %18, %20 : vector<8x32xf32>
    %cst_13 = arith.constant dense<0xFF800000> : vector<8xf32>
    %22 = vector.multi_reduction <maximumf>, %21, %cst_13 [1] : vector<8x32xf32> to vector<8xf32>
    %23 = vector.shape_cast %22 : vector<8xf32> to vector<8x1xf32>
    %24 = vector.broadcast %23 : vector<8x1xf32> to vector<8x32xf32>
    %25 = arith.subf %21, %24 : vector<8x32xf32>
    %26 = math.exp %25 : vector<8x32xf32>
    %cst_14 = arith.constant dense<0.000000e+00> : vector<8xf32>
    %27 = vector.multi_reduction <add>, %26, %cst_14 [1] : vector<8x32xf32> to vector<8xf32>
    %28 = vector.shape_cast %27 : vector<8xf32> to vector<8x1xf32>
    %29 = tpu.reciprocal %28 {approx = true} : vector<8x1xf32> -> vector<8x1xf32>
    %30 = vector.broadcast %29 : vector<8x1xf32> to vector<8x32xf32>
    %31 = arith.mulf %26, %30 : vector<8x32xf32>
    %c0_15 = arith.constant 0 : index
    %c0_16 = arith.constant 0 : index
    %32 = vector.load %arg6[%c0_15, %c0_16] : memref<8x32xf32, #tpu.memory_space<vmem>>, vector<8x32xf32>
    tpu.vector_store %arg6[%c0_15, %c0_16], %31 {strides = array<i32>} : memref<8x32xf32, #tpu.memory_space<vmem>>, vector<8x32xf32>,
    %33 = tpu.concatenate %31, %31, %31, %31 in 1 : vector<8x32xf32>, vector<8x32xf32>, vector<8x32xf32>, vector<8x32xf32> -> vector<8x128xf32>
    %34 = vector.shape_cast %33 : vector<8x128xf32> to vector<8x1x128xf32>
    %35 = vector.broadcast %34 : vector<8x1x128xf32> to vector<8x96x128xf32>
    %36 = arith.mulf %0, %35 : vector<8x96x128xf32>
    %c0_17 = arith.constant 0 : index
    %c0_18 = arith.constant 0 : index
    %c0_19 = arith.constant 0 : index
    %37 = vector.load %arg7[%c0_17, %c0_18, %c0_19] : memref<8x96x128xf32, #tpu.memory_space<vmem>>, vector<8x96x128xf32>
    tpu.vector_store %arg7[%c0_17, %c0_18, %c0_19], %36 {strides = array<i32>} : memref<8x96x128xf32, #tpu.memory_space<vmem>>, vector<8x96x128xf32>,
    return
  }
  func.func @transform_0(%arg0: i32) -> (i32, i32, i32) {
    %c0_i32 = arith.constant 0 : i32
    %c0_i32_0 = arith.constant 0 : i32
    %c0_i32_1 = arith.constant 0 : i32
    return %arg0, %c0_i32, %c0_i32_0 : i32, i32, i32
  }
  func.func @transform_1(%arg0: i32) -> (i32, i32) {
    %c0_i32 = arith.constant 0 : i32
    %c0_i32_0 = arith.constant 0 : i32
    %c0_i32_1 = arith.constant 0 : i32
    return %c0_i32, %c0_i32_0 : i32, i32
  }
  func.func @transform_2(%arg0: i32) -> (i32, i32) {
    %c0_i32 = arith.constant 0 : i32
    %c0_i32_0 = arith.constant 0 : i32
    %c0_i32_1 = arith.constant 0 : i32
    return %c0_i32, %c0_i32_0 : i32, i32
  }
  func.func @transform_3(%arg0: i32) -> (i32, i32) {
    %c0_i32 = arith.constant 0 : i32
    %c0_i32_0 = arith.constant 0 : i32
    %c0_i32_1 = arith.constant 0 : i32
    return %c0_i32, %c0_i32_0 : i32, i32
  }
  func.func @transform_4(%arg0: i32) -> (i32, i32) {
    %c0_i32 = arith.constant 0 : i32
    %c0_i32_0 = arith.constant 0 : i32
    %c0_i32_1 = arith.constant 0 : i32
    return %c0_i32, %c0_i32_0 : i32, i32
  }
  func.func @transform_5(%arg0: i32) -> (i32, i32) {
    %c0_i32 = arith.constant 0 : i32
    %c0_i32_0 = arith.constant 0 : i32
    return %arg0, %c0_i32 : i32, i32
  }
  func.func @transform_6(%arg0: i32) -> (i32, i32, i32) {
    %c0_i32 = arith.constant 0 : i32
    %c0_i32_0 = arith.constant 0 : i32
    %c0_i32_1 = arith.constant 0 : i32
    return %arg0, %c0_i32, %c0_i32_0 : i32, i32, i32
  }
}

</mosaic_0001>

<bundles_post_ra>
// kernel: tpu_custom_call.1
= control target key start
LH: loop header
LB: loop body
LE: loop exit
PB: predicated region body
PF: predicated region fallthrough
CT: control target
= control target key end

     0   :  { %12 = vsyncpa [#allocation3], 0  ;;  %s1658_s0 = inlined_call_operand.hbm [shape: f32[8,96,128], index: 0, kind: input, shape index: {}]   ;;  %s1659_s1 = inlined_call_operand.vmem [shape: f32[32,8], index: 1, kind: input, shape index: {}]   ;;  %s1660_s2 = inlined_call_operand.vmem [shape: f32[1,8], index: 2, kind: input, shape index: {}]   ;;  %s1661_s3 = inlined_call_operand.vmem [shape: f32[8,32], index: 3, kind: input, shape index: {}]   ;;  %s1662_s4 = inlined_call_operand.vmem [shape: f32[1,32], index: 4, kind: input, shape index: {}]   ;;  %s1663_s5 = inlined_call_operand.hbm [shape: f32[8,32], index: 5, kind: output, shape index: {0}]   ;;  %s1664_s6 = inlined_call_operand.hbm [shape: f32[8,96,128], index: 6, kind: output, shape index: {1}]  }
   0x1   :  { %13 = vsyncpa [#allocation4], 0 }
   0x2   :  { %14 = vsyncpa [#allocation7], 0  ;;  %s1028_s21 = smov [#allocation2]  }
   0x3   :  { %s20_s22 = sshll.u32 %s1028_s21, 4  ;;  %s21_s22 = int_to_ptr.vmem [resolvable:$true] %s20_s22 }
   0x4   :  { %s970_s23 = scalar_lea.vmem %s21_s22, 12288  ;;  %p975_p1 = scmp.lt.s32.totalorder %s21_s22, %s21_s22 }
   0x5   :  { %p971_p0 = scmp.ne.s32.totalorder %s21_s22, %s970_s23  ;;  %p976_p2 = scmp.lt.s32.totalorder %s970_s23, %s970_s23 }
   0x7   :  { %p977_p3 = por %p976_p2, %p975_p1 }
   0x9   :  { %p978_p4 = pnand %p977_p3, %p971_p0 }
   0xb   :  { %981 = shalt.err (!%p978_p4)
}
   0xc   :  { %s1029_s24 = smov 128   ;;  %s1030_s25 = smov 8  }
   0xd   :  { %26 = dma.hbm_to_vmem [thread:$0]  %s1658_s0, 12288, %s21_s22, [#allocation3], %s1029_s24, %s1029_s24, %s1030_s25  }
   0xe   :  { %1022 = dma.done.wait [#allocation3], 12288  }
   0xf   :  { %1023 = vsyncadd [#allocation3], 4294955008  ;;  %v1080_v0 = vld [vmem:[#allocation2 + $0x60] sm:$0xff]  ;;  %v1082_v1 = vld [vmem:[#allocation2 + $0x68] sm:$0xff]  ;;  %s1031_s0 = smov 96   ;;  %s1032_s28 = smov 64  }
  0x10   :  { %v1084_v2 = vld [vmem:[#allocation2 + $0x70] sm:$0xff]  ;;  %v151_v3 = vadd.f32 %v1082_v1, %v1080_v0  ;;  %v1088_v4 = vld [vmem:[#allocation2 + $0x78] sm:$0xff]  ;;  %v1090_v5 = vld [vmem:[#allocation2 + $0x80] sm:$0xff]  ;;  %s1033_s29 = smov 32   ;;  %vm1035_vm0 = vmmov 0   ;;  %vm402_vm1 = vcmask 1041409  }
  0x11   :  { %v1093_v7 = vld [vmem:[#allocation2] sm:$0xff]  ;;  %v1095_v8 = vld [vmem:[#allocation2 + $0x8] sm:$0xff]  ;;  %v1097_v9 = vld [vmem:[#allocation2 + $0x10] sm:$0xff]  ;;  %vm405_vm2 = vcmask 1042434   ;;  %vm408_vm3 = vcmask 1043459   ;;  %vm411_vm4 = vcmask 1044484  }
  0x12   :  { %v152_v6 = vadd.f32 %v151_v3, %v1084_v2  ;;  %v134_v11 = vadd.f32 %v1095_v8, %v1093_v7  ;;  %v1102_v12 = vld [vmem:[#allocation2 + $0x88] sm:$0xff]  ;;  %v1104_v13 = vld [vmem:[#allocation2 + $0x18] sm:$0xff]  ;;  %v1106_v14 = vld [vmem:[#allocation2 + $0x90] sm:$0xff]  ;;  %vm414_vm5 = vcmask 1045509   ;;  %vm417_vm6 = vcmask 1046534  }
  0x13   :  { %v1109_v16 = vld [vmem:[#allocation2 + $0x20] sm:$0xff]  ;;  %v1114_v19 = vld [vmem:[#allocation2 + $0xc8] sm:$0xff]  ;;  %v1116_v20 = vld [vmem:[#allocation2 + $0xd0] sm:$0xff]  ;;  %vm420_vm7 = vcmask 1047559   ;;  %vm422_vm8 = vcmask 261120   ;;  %vm504_vm9 = vcmask 64512  }
  0x14   :  { %v153_v10 = vadd.f32 %v152_v6, %v1088_v4  ;;  %v135_v17 = vadd.f32 %v134_v11, %v1097_v9  ;;  %v1112_v18 = vld [vmem:[#allocation2 + $0xc0] sm:$0xff]  ;;  %1736 = vst [vmem:[#allocation11_spill] sm:$0xff] %v1114_v19  ;;  %1737 = vst [vmem:[#allocation12_spill] sm:$0xff] %v1116_v20  ;;  %v1122_v24 = vld [vmem:[#allocation2 + $0x98] sm:$0xff] }
  0x15   :  { %v168_v23 = vadd.f32 %v1114_v19, %v1112_v18  ;;  %v1124_v25 = vld [vmem:[#allocation2 + $0x28] sm:$0xff]  ;;  %v1126_v26 = vld [vmem:[#allocation2 + $0xd8] sm:$0xff]  ;;  %v1128_v27 = vld [vmem:[#allocation2 + $0xa0] sm:$0xff] }
  0x16   :  { %v154_v15 = vadd.f32 %v153_v10, %v1090_v5  ;;  %v136_v22 = vadd.f32 %v135_v17, %v1104_v13  ;;  %1738 = vst [vmem:[#allocation13_spill] sm:$0xff] %v1126_v26  ;;  %v1131_v29 = vld [vmem:[#allocation2 + $0x30] sm:$0xff]  ;;  %v1134_v31 = vld [vmem:[#allocation2 + $0xe0] sm:$0xff]  ;;  %v1139_v34 = vld [vmem:[#allocation2 + $0x128] sm:$0xff] }
  0x17   :  { %1739 = vst [vmem:[#allocation14_spill] sm:$0xff] %v1134_v31  ;;  %v169_v32 = vadd.f32 %v168_v23, %v1116_v20  ;;  %v1137_v33 = vld [vmem:[#allocation2 + $0x120] sm:$0xff]  ;;  %1741 = vst [vmem:[#allocation16_spill] sm:$0xff] %v1139_v34  ;;  %v1141_v35 = vld [vmem:[#allocation2 + $0x130] sm:$0xff] }
  0x18   :  { %v155_v21 = vadd.f32 %v154_v15, %v1102_v12  ;;  %v137_v30 = vadd.f32 %v136_v22, %v1109_v16  ;;  %1740 = vst [vmem:[#allocation15_spill] sm:$0xff] %v1137_v33  ;;  %1742 = vst [vmem:[#allocation17_spill] sm:$0xff] %v1141_v35  ;;  %v1143_v36 = vld [vmem:[#allocation2 + $0xa8] sm:$0xff]  ;;  %v185_v40 = vadd.f32 %v1139_v34, %v1137_v33  ;;  %v1150_v41 = vld [vmem:[#allocation2 + $0x38] sm:$0xff] }
  0x19   :  { %v170_v39 = vadd.f32 %v169_v32, %v1126_v26  ;;  %v1152_v42 = vld [vmem:[#allocation2 + $0xe8] sm:$0xff]  ;;  %v1154_v43 = vld [vmem:[#allocation2 + $0x138] sm:$0xff]  ;;  %v1156_v44 = vld [vmem:[#allocation2 + $0xb0] sm:$0xff] }
  0x1a   :  { %v156_v28 = vadd.f32 %v155_v21, %v1106_v14  ;;  %v138_v38 = vadd.f32 %v137_v30, %v1124_v25  ;;  %1743 = vst [vmem:[#allocation18_spill] sm:$0xff] %v1152_v42  ;;  %1744 = vst [vmem:[#allocation19_spill] sm:$0xff] %v1154_v43  ;;  %v1159_v46 = vld [vmem:[#allocation2 + $0x40] sm:$0xff]  ;;  %v1162_v48 = vld [vmem:[#allocation2 + $0xf0] sm:$0xff]  ;;  %v186_v50 = vadd.f32 %v185_v40, %v1141_v35 }
  0x1b   :  { %1745 = vst [vmem:[#allocation20_spill] sm:$0xff] %v1162_v48  ;;  %v171_v49 = vadd.f32 %v170_v39, %v1134_v31  ;;  %v1166_v51 = vld [vmem:[#allocation2 + $0x140] sm:$0xff]  ;;  %v1170_v53 = vld [vmem:[#allocation2 + $0x188] sm:$0xff]  ;;  %v1172_v54 = vld [vmem:[#allocation2 + $0xb8] sm:$0xff] }
  0x1c   :  { %v157_v37 = vadd.f32 %v156_v28, %v1122_v24  ;;  %v139_v47 = vadd.f32 %v138_v38, %v1131_v29  ;;  %1746 = vst [vmem:[#allocation21_spill] sm:$0xff] %v1166_v51  ;;  %v1168_v52 = vld [vmem:[#allocation2 + $0x180] sm:$0xff]  ;;  %1748 = vst [vmem:[#allocation23_spill] sm:$0xff] %v1170_v53  ;;  %v187_v58 = vadd.f32 %v186_v50, %v1154_v43  ;;  %v1178_v59 = vld [vmem:[#allocation2 + $0x190] sm:$0xff] }
  0x1d   :  { %1747 = vst [vmem:[#allocation22_spill] sm:$0xff] %v1168_v52  ;;  %v172_v57 = vadd.f32 %v171_v49, %v1152_v42  ;;  %1749 = vst [vmem:[#allocation24_spill] sm:$0xff] %v1178_v59  ;;  %v1180_v60 = vld [vmem:[#allocation2 + $0x48] sm:$0xff]  ;;  %v1182_v61 = vld [vmem:[#allocation2 + $0xf8] sm:$0xff]  ;;  %v202_v63 = vadd.f32 %v1170_v53, %v1168_v52 }
  0x1e   :  { %v158_v45 = vadd.f32 %v157_v37, %v1128_v27  ;;  %v140_v56 = vadd.f32 %v139_v47, %v1150_v41  ;;  %1750 = vst [vmem:[#allocation25_spill] sm:$0xff] %v1182_v61  ;;  %v1184_v62 = vld [vmem:[#allocation2 + $0x148] sm:$0xff]  ;;  %v1189_v6 = vld [vmem:[#allocation2 + $0x50] sm:$0xff]  ;;  %v1192_v11 = vld [vmem:[#allocation2 + $0x100] sm:$0xff]  ;;  %v188_v17 = vadd.f32 %v187_v58, %v1166_v51 }
  0x1f   :  { %1751 = vst [vmem:[#allocation26_spill] sm:$0xff] %v1184_v62  ;;  %1752 = vst [vmem:[#allocation27_spill] sm:$0xff] %v1192_v11  ;;  %v173_v15 = vadd.f32 %v172_v57, %v1162_v48  ;;  %v1196_v21 = vld [vmem:[#allocation2 + $0x198] sm:$0xff]  ;;  %v1198_v22 = vld [vmem:[#allocation2 + $0x150] sm:$0xff]  ;;  %v203_v23 = vadd.f32 %v202_v63, %v1178_v59 }
  0x20   :  { %v159_v55 = vadd.f32 %v158_v45, %v1143_v36  ;;  %v141_v10 = vadd.f32 %v140_v56, %v1159_v46  ;;  %1753 = vst [vmem:[#allocation28_spill] sm:$0xff] %v1196_v21  ;;  %1754 = vst [vmem:[#allocation29_spill] sm:$0xff] %v1198_v22  ;;  %v1201_v28 = vld [vmem:[#allocation2 + $0x1e0] sm:$0xff]  ;;  %v1203_v30 = vld [vmem:[#allocation2 + $0x1e8] sm:$0xff]  ;;  %v189_v39 = vadd.f32 %v188_v17, %v1184_v62 }
  0x21   :  { %1755 = vst [vmem:[#allocation30_spill] sm:$0xff] %v1201_v28  ;;  %1756 = vst [vmem:[#allocation31_spill] sm:$0xff] %v1203_v30  ;;  %v174_v38 = vadd.f32 %v173_v15, %v1182_v61  ;;  %v1209_v40 = vld [vmem:[#allocation2 + $0x1a0] sm:$0xff]  ;;  %v1211_v45 = vld [vmem:[#allocation2 + $0x1f0] sm:$0xff]  ;;  %v219_v56 = vadd.f32 %v1203_v30, %v1201_v28 }
  0x22   :  { %v160_v3 = vadd.f32 %v159_v55, %v1156_v44  ;;  %v142_v37 = vadd.f32 %v141_v10, %v1180_v60  ;;  %1757 = vst [vmem:[#allocation32_spill] sm:$0xff] %v1209_v40  ;;  %1758 = vst [vmem:[#allocation33_spill] sm:$0xff] %v1211_v45  ;;  %v1213_v47 = vld [vmem:[#allocation2 + $0x58] sm:$0xff]  ;;  %v1215_v49 = vld [vmem:[#allocation2 + $0x108] sm:$0xff]  ;;  %v204_v55 = vadd.f32 %v203_v23, %v1196_v21 }
  0x23   :  { %1759 = vst [vmem:[#allocation34_spill] sm:$0xff] %v1215_v49  ;;  %v1217_v50 = vld [vmem:[#allocation2 + $0x158] sm:$0xff]  ;;  %v1223_v63 = vld [vmem:[#allocation2 + $0x110] sm:$0xff]  ;;  %v190_v10 = vadd.f32 %v189_v39, %v1198_v22  ;;  %v1227_v15 = vld [vmem:[#allocation2 + $0x1a8] sm:$0xff]  ;;  %v220_v21 = vadd.f32 %v219_v56, %v1211_v45 }
  0x24   :  { %v161_v32 = vadd.f32 %v160_v3, %v1172_v54  ;;  %1760 = vst [vmem:[#allocation35_spill] sm:$0xff] %v1217_v50  ;;  %v143_v58 = vadd.f32 %v142_v37, %v1189_v6  ;;  %1761 = vst [vmem:[#allocation36_spill] sm:$0xff] %v1223_v63  ;;  %v175_v3 = vadd.f32 %v174_v38, %v1192_v11  ;;  %v1229_v17 = vld [vmem:[#allocation2 + $0x1f8] sm:$0xff]  ;;  %v1231_v59 = vld [vmem:[#allocation2 + $0x160] sm:$0xff] }
  0x25   :  { %1762 = vst [vmem:[#allocation37_spill] sm:$0xff] %v1227_v15  ;;  %1763 = vst [vmem:[#allocation38_spill] sm:$0xff] %v1229_v17  ;;  %v205_v23 = vadd.f32 %v204_v55, %v1209_v40  ;;  %v1235_v30 = vld [vmem:[#allocation2 + $0x240] sm:$0xff]  ;;  %v1237_v28 = vld [vmem:[#allocation2 + $0x248] sm:$0xff]  ;;  %v191_v39 = vadd.f32 %v190_v10, %v1217_v50 }
  0x26   :  { %v162_v57 = vrot.slane %v161_v32, 4  ;;  %1764 = vst [vmem:[#allocation39_spill] sm:$0xff] %v1231_v59  ;;  %1765 = vst [vmem:[#allocation40_spill] sm:$0xff] %v1235_v30  ;;  %v144_v53 = vadd.f32 %v143_v58, %v1213_v47  ;;  %v176_v38 = vadd.f32 %v175_v3, %v1215_v49  ;;  %v1242_v52 = vld [vmem:[#allocation2 + $0x1b0] sm:$0xff]  ;;  %v1244_v22 = vld [vmem:[#allocation2 + $0x200] sm:$0xff]  ;;  %v236_v58 = vadd.f32 %v1237_v28, %v1235_v30 }
  0x27   :  { %1766 = vst [vmem:[#allocation41_spill] sm:$0xff] %v1237_v28  ;;  %1767 = vst [vmem:[#allocation42_spill] sm:$0xff] %v1242_v52  ;;  %v1246_v62 = vld [vmem:[#allocation2 + $0x250] sm:$0xff]  ;;  %v1248_v55 = vld [vmem:[#allocation2 + $0x118] sm:$0xff]  ;;  %v192_v50 = vadd.f32 %v191_v39, %v1231_v59 }
  0x28   :  { %v163_v37 = vadd.f32 %v162_v57, %v161_v32  ;;  %1768 = vst [vmem:[#allocation43_spill] sm:$0xff] %v1244_v22  ;;  %1769 = vst [vmem:[#allocation44_spill] sm:$0xff] %v1246_v62  ;;  %v1250_v56 = vld [vmem:[#allocation2 + $0x168] sm:$0xff]  ;;  %v1252_v45 = vld [vmem:[#allocation2 + $0x170] sm:$0xff]  ;;  %v206_v32 = vadd.f32 %v205_v23, %v1227_v15  ;;  %v221_v57 = vadd.f32 %v220_v21, %v1229_v17  ;;  %v145_v10 = vrot.slane %v144_v53, 4 }
  0x29   :  { %1770 = vst [vmem:[#allocation45_spill] sm:$0xff] %v1248_v55  ;;  %1771 = vst [vmem:[#allocation46_spill] sm:$0xff] %v1250_v56  ;;  %v177_v40 = vadd.f32 %v176_v38, %v1223_v63  ;;  %v1260_v51 = vld [vmem:[#allocation2 + $0x1b8] sm:$0xff]  ;;  %v1262_v43 = vld [vmem:[#allocation2 + $0x208] sm:$0xff]  ;;  %v237_v28 = vadd.f32 %v236_v58, %v1246_v62  ;;  %v193_v59 = vadd.f32 %v192_v50, %v1250_v56 }
  0x2a   :  { %1772 = vst [vmem:[#allocation47_spill] sm:$0xff] %v1252_v45  ;;  %v164_v3 = vrot.slane %v163_v37, 2  ;;  %1773 = vst [vmem:[#allocation48_spill] sm:$0xff] %v1260_v51  ;;  %v1264_v35 = vld [vmem:[#allocation2 + $0x258] sm:$0xff]  ;;  %v1266_v34 = vld [vmem:[#allocation2 + $0x1c0] sm:$0xff]  ;;  %v207_v23 = vadd.f32 %v206_v32, %v1242_v52  ;;  %v222_v21 = vadd.f32 %v221_v57, %v1244_v22  ;;  %v146_v39 = vadd.f32 %v145_v10, %v144_v53 }
  0x2b   :  { %1774 = vst [vmem:[#allocation49_spill] sm:$0xff] %v1262_v43  ;;  %1775 = vst [vmem:[#allocation50_spill] sm:$0xff] %v1264_v35  ;;  %v1271_v30 = vld [vmem:[#allocation2 + $0x2a0] sm:$0xff]  ;;  %v1273_v17 = vld [vmem:[#allocation2 + $0x2a8] sm:$0xff]  ;;  %v178_v15 = vadd.f32 %v177_v40, %v1248_v55  ;;  %v238_v53 = vadd.f32 %v237_v28, %v1264_v35  ;;  %v194_v10 = vadd.f32 %v193_v59, %v1252_v45 }
  0x2c   :  { %1776 = vst [vmem:[#allocation51_spill] sm:$0xff] %v1266_v34  ;;  %1777 = vst [vmem:[#allocation52_spill] sm:$0xff] %v1271_v30  ;;  %v165_v38 = vadd.f32 %v164_v3, %v163_v37  ;;  %v1277_v33 = vld [vmem:[#allocation2 + $0x210] sm:$0xff]  ;;  %v1279_v63 = vld [vmem:[#allocation2 + $0x260] sm:$0xff]  ;;  %v208_v58 = vadd.f32 %v207_v23, %v1260_v51  ;;  %v223_v62 = vadd.f32 %v222_v21, %v1262_v43  ;;  %v147_v37 = vrot.slane %v146_v39, 2 }
  0x2d   :  { %1778 = vst [vmem:[#allocation53_spill] sm:$0xff] %v1273_v17  ;;  %1779 = vst [vmem:[#allocation54_spill] sm:$0xff] %v1277_v33  ;;  %v1281_v49 = vld [vmem:[#allocation2 + $0x2b0] sm:$0xff]  ;;  %v1283_v32 = vld [vmem:[#allocation2 + $0x178] sm:$0xff]  ;;  %v253_v40 = vadd.f32 %v1273_v17, %v1271_v30  ;;  %v179_v3 = vrot.slane %v178_v15, 4  ;;  %v239_v21 = vadd.f32 %v238_v53, %v1279_v63 }
  0x2e   :  { %1780 = vst [vmem:[#allocation55_spill] sm:$0xff] %v1279_v63  ;;  %1781 = vst [vmem:[#allocation56_spill] sm:$0xff] %v1281_v49  ;;  %v1285_v57 = vld [vmem:[#allocation2 + $0x1c8] sm:$0xff]  ;;  %v166_v50 = vrot.slane %v165_v38, 1  ;;  %v1293_v22 = vld [vmem:[#allocation2 + $0x218] sm:$0xff]  ;;  %v209_v23 = vadd.f32 %v208_v58, %v1266_v34  ;;  %v224_v28 = vadd.f32 %v223_v62, %v1277_v33  ;;  %v148_v35 = vadd.f32 %v147_v37, %v146_v39 }
  0x2f   :  { %1782 = vst [vmem:[#allocation57_spill] sm:$0xff] %v1283_v32  ;;  %1783 = vst [vmem:[#allocation58_spill] sm:$0xff] %v1285_v57  ;;  %v1295_v52 = vld [vmem:[#allocation2 + $0x268] sm:$0xff]  ;;  %v1297_v56 = vld [vmem:[#allocation2 + $0x2b8] sm:$0xff]  ;;  %v254_v17 = vadd.f32 %v253_v40, %v1281_v49  ;;  %v180_v59 = vadd.f32 %v179_v3, %v178_v15  ;;  %v195_v43 = vadd.f32 %v194_v10, %v1283_v32 }
  0x30   :  { %1784 = vst [vmem:[#allocation59_spill] sm:$0xff] %v1293_v22  ;;  %1785 = vst [vmem:[#allocation60_spill] sm:$0xff] %v1295_v52  ;;  %v1299_v55 = vld [vmem:[#allocation2 + $0x1d0] sm:$0xff]  ;;  %v1305_v30 = vadd.f32 %v166_v50, %v165_v38  ;;  %v1308_v51 = vld [vmem:[#allocation2 + $0x220] sm:$0xff]  ;;  %v210_v62 = vadd.f32 %v209_v23, %v1285_v57  ;;  %v225_v58 = vadd.f32 %v224_v28, %v1293_v22  ;;  %v149_v15 = vrot.slane %v148_v35, 1 }
  0x31   :  { %1786 = vst [vmem:[#allocation61_spill] sm:$0xff] %v1297_v56  ;;  %1787 = vst [vmem:[#allocation62_spill] sm:$0xff] %v1299_v55  ;;  %v1310_v45 = vld [vmem:[#allocation2 + $0x270] sm:$0xff]  ;;  %v1312_v11 = vld [vmem:[#allocation2 + $0x2c0] sm:$0xff]  ;;  %v240_v53 = vadd.f32 %v239_v21, %v1295_v52  ;;  %v255_v38 = vadd.f32 %v254_v17, %v1297_v56  ;;  %v181_v39 = vrot.slane %v180_v59, 2  ;;  %v196_v40 = vrot.slane %v195_v43, 4 }
  0x32   :  { %1788 = vst [vmem:[#allocation63_spill] sm:$0xff] %v1308_v51  ;;  %1789 = vst [vmem:[#allocation64_spill] sm:$0xff] %v1310_v45  ;;  %v1314_v61 = vld [vmem:[#allocation2 + $0x1d8] sm:$0xff]  ;;  %280 = vrot.lane.b32.xlu0 %v1305_v30, %s1031_s0  ;;  %v1322_v50 = vld [vmem:[#allocation2 + $0x228] sm:$0xff]  ;;  %v211_v10 = vadd.f32 %v210_v62, %v1299_v55  ;;  %v226_v23 = vadd.f32 %v225_v58, %v1308_v51  ;;  %v1332_v21 = vadd.f32 %v149_v15, %v148_v35 }
  0x33   :  { %1790 = vst [vmem:[#allocation65_spill] sm:$0xff] %v1312_v11  ;;  %1791 = vst [vmem:[#allocation66_spill] sm:$0xff] %v1314_v61  ;;  %v1324_v37 = vld [vmem:[#allocation2 + $0x278] sm:$0xff]  ;;  %v1326_v3 = vld [vmem:[#allocation2 + $0x2c8] sm:$0xff]  ;;  %v241_v28 = vadd.f32 %v240_v53, %v1310_v45  ;;  %v256_v17 = vadd.f32 %v255_v38, %v1312_v11  ;;  %v182_v56 = vadd.f32 %v181_v39, %v180_v59 }
  0x34   :  { %1792 = vst [vmem:[#allocation67_spill] sm:$0xff] %v1322_v50  ;;  %1793 = vst [vmem:[#allocation68_spill] sm:$0xff] %v1324_v37  ;;  %v197_v49 = vadd.f32 %v196_v40, %v195_v43  ;;  %v1334_v52 = vld [vmem:[#allocation2 + $0x230] sm:$0xff]  ;;  %v1336_v63 = vld [vmem:[#allocation2 + $0x280] sm:$0xff]  ;;  %v212_v33 = vadd.f32 %v211_v10, %v1314_v61  ;;  %v227_v62 = vadd.f32 %v226_v23, %v1322_v50  ;;  %278 = vrot.lane.b32.xlu1 %v1332_v21, %s1031_s0 }
  0x35   :  { %1794 = vst [vmem:[#allocation69_spill] sm:$0xff] %v1326_v3  ;;  %1795 = vst [vmem:[#allocation70_spill] sm:$0xff] %v1334_v52  ;;  %v1338_v22 = vld [vmem:[#allocation2 + $0x2d0] sm:$0xff]  ;;  %v242_v58 = vadd.f32 %v241_v28, %v1324_v37  ;;  %v257_v53 = vadd.f32 %v256_v17, %v1326_v3  ;;  %v183_v35 = vrot.slane %v182_v56, 1  ;;  %v1346_v43 = vld [vmem:[#allocation2 + $0x238] sm:$0xff] }
  0x36   :  { %1796 = vst [vmem:[#allocation71_spill] sm:$0xff] %v1336_v63  ;;  %1797 = vst [vmem:[#allocation72_spill] sm:$0xff] %v1338_v22  ;;  %v198_v59 = vrot.slane %v197_v49, 2  ;;  %v1348_v38 = vld [vmem:[#allocation2 + $0x288] sm:$0xff]  ;;  %v1350_v15 = vld [vmem:[#allocation2 + $0x2d8] sm:$0xff]  ;;  %v213_v39 = vrot.slane %v212_v33, 4  ;;  %v228_v40 = vadd.f32 %v227_v62, %v1334_v52 }
  0x37   :  { %1798 = vst [vmem:[#allocation73_spill] sm:$0xff] %v1346_v43  ;;  %1799 = vst [vmem:[#allocation74_spill] sm:$0xff] %v1348_v38  ;;  %v243_v10 = vadd.f32 %v242_v58, %v1336_v63  ;;  %v258_v23 = vadd.f32 %v257_v53, %v1338_v22  ;;  %v1355_v28 = vadd.f32 %v183_v35, %v182_v56  ;;  %v1357_v3 = vld [vmem:[#allocation2 + $0x290] sm:$0xff]  ;;  %v1359_v11 = vld [vmem:[#allocation2 + $0x2e0] sm:$0xff] }
  0x38   :  { %1800 = vst [vmem:[#allocation75_spill] sm:$0xff] %v1350_v15  ;;  %v199_v17 = vadd.f32 %v198_v59, %v197_v49  ;;  %1801 = vst [vmem:[#allocation76_spill] sm:$0xff] %v1357_v3  ;;  %v214_v37 = vadd.f32 %v213_v39, %v212_v33  ;;  %v229_v45 = vadd.f32 %v228_v40, %v1346_v43  ;;  %v1366_v58 = vld [vmem:[#allocation2 + $0x298] sm:$0xff]  ;;  %v1368_v56 = vld [vmem:[#allocation2 + $0x2e8] sm:$0xff] }
  0x39   :  { %1802 = vst [vmem:[#allocation77_spill] sm:$0xff] %v1359_v11  ;;  %v244_v50 = vadd.f32 %v243_v10, %v1348_v38  ;;  %v259_v51 = vadd.f32 %v258_v23, %v1350_v15  ;;  %282 = vrot.lane.b32.xlu0 %v1355_v28, %s1031_s0  ;;  %1803 = vst [vmem:[#allocation78_spill] sm:$0xff] %v1366_v58  ;;  %v1374_v39 = vld [vmem:[#allocation2 + $0x2f0] sm:$0xff] }
  0x3a   :  { %v200_v62 = vrot.slane %v199_v17, 1  ;;  %1804 = vst [vmem:[#allocation79_spill] sm:$0xff] %v1368_v56  ;;  %v215_v49 = vrot.slane %v214_v37, 2  ;;  %v230_v53 = vrot.slane %v229_v45, 4  ;;  %1805 = vst [vmem:[#allocation80_spill] sm:$0xff] %v1374_v39 }
  0x3b   :  { %v245_v35 = vadd.f32 %v244_v50, %v1357_v3  ;;  %v260_v33 = vadd.f32 %v259_v51, %v1359_v11  ;;  %v1382_v50 = vld [vmem:[#allocation2 + $0x2f8] sm:$0xff] }
  0x3c   :  { %v1372_v59 = vadd.f32 %v200_v62, %v199_v17  ;;  %v216_v40 = vadd.f32 %v215_v49, %v214_v37  ;;  %v231_v10 = vadd.f32 %v230_v53, %v229_v45  ;;  %1806 = vst [vmem:[#allocation81_spill] sm:$0xff] %v1382_v50 }
  0x3d   :  { %v246_v23 = vadd.f32 %v245_v35, %v1366_v58  ;;  %v261_v15 = vadd.f32 %v260_v33, %v1368_v56  ;;  %312 = vrot.lane.b32.xlu0 %v1305_v30, %s1032_s28 }
  0x3e   :  { %284 = vrot.lane.b32.xlu1 %v1372_v59, %s1031_s0  ;;  %v217_v51 = vrot.slane %v216_v40, 1  ;;  %v232_v17 = vrot.slane %v231_v10, 2 }
  0x3f   :  { %v247_v62 = vrot.slane %v246_v23, 4  ;;  %v262_v11 = vadd.f32 %v261_v15, %v1374_v39 }
  0x40   :  { %v1385_v37 = vadd.f32 %v217_v51, %v216_v40  ;;  %v233_v45 = vadd.f32 %v232_v17, %v231_v10  ;;  %v384_v51 = vld [vmem:[%s1659_s1 + $0x10] sm:$0xff]  ;;  %v383_v17 = vld [vmem:[%s1659_s1 + $0x8] sm:$0xff] }
  0x41   :  { %v248_v49 = vadd.f32 %v247_v62, %v246_v23  ;;  %v263_v53 = vadd.f32 %v262_v11, %v1382_v50  ;;  %314 = vrot.lane.b32.xlu0 %v1355_v28, %s1032_s28  ;;  %v382_v62 = vld [vmem:[%s1659_s1] sm:$0xff] }
  0x42   :  { %286 = vrot.lane.b32.xlu1 %v1385_v37, %s1031_s0  ;;  %v234_v35 = vrot.slane %v233_v45, 1 }
  0x43   :  { %v249_v33 = vrot.slane %v248_v49, 2  ;;  %v264_v56 = vrot.slane %v263_v53, 4 }
  0x44   :  { %v1392_v22 = vadd.f32 %v234_v35, %v233_v45 }
  0x45   :  { %v250_v58 = vadd.f32 %v249_v33, %v248_v49  ;;  %v265_v3 = vadd.f32 %v264_v56, %v263_v53  ;;  %310 = vrot.lane.b32.xlu0 %v1332_v21, %s1032_s28 }
  0x46   :  { %288 = vrot.lane.b32.xlu1 %v1392_v22, %s1031_s0 }
  0x47   :  { %v251_v11 = vrot.slane %v250_v58, 1  ;;  %v266_v15 = vrot.slane %v265_v3, 2 }
  0x49   :  { %v267_v40 = vadd.f32 %v266_v15, %v265_v3  ;;  %344 = vrot.lane.b32.xlu0 %v1305_v30, %s1033_s29  ;;  %v1402_v10 = vadd.f32 %v251_v11, %v250_v58  ;;  %v1034_v3 = vmov 0.0   ;;  %v385_v58 = vld [vmem:[%s1659_s1 + $0x18] sm:$0xff] }
  0x4a   :  { %316 = vrot.lane.b32.xlu1 %v1372_v59, %s1032_s28  ;;  %929 = vmatprep.subr.mxu0 %v1034_v3 }
  0x4b   :  { %v268_v23 = vrot.slane %v267_v40, 1  ;;  %930 = vmatpush3.msra.mxu0 %v385_v58  ;;  %940 = vmatprep.subr.mxu1 %v1034_v3 }
  0x4c   :  { %931 = vmatprep.subr.mxu0 %v1034_v3  ;;  %937 = vmatprep.mubr.msk.f32.mxu0 %vm1035_vm0, %v1034_v3 }
  0x4d   :  { %318 = vrot.lane.b32.xlu0 %v1385_v37, %s1032_s28  ;;  %v1406_v56 = vadd.f32 %v268_v23, %v267_v40  ;;  %932 = vmatpush3.msra.mxu0 %v384_v51 }
  0x4e   :  { %290 = vrot.lane.b32.xlu1 %v1402_v10, %s1031_s0  ;;  %933 = vmatprep.subr.mxu0 %v1034_v3 }
  0x4f   :  { %934 = vmatpush3.msra.mxu0 %v383_v17  ;;  %942 = vmatprep.mubr.msk.f32.mxu1 %vm1035_vm0, %v1034_v3 }
  0x50   :  { %935 = vmatprep.subr.mxu0 %v1034_v3 }
  0x51   :  { %292 = vrot.lane.b32.xlu0 %v1406_v56, %s1031_s0  ;;  %936 = vmatpush3.msra.mxu0 %v382_v62 }
  0x52   :  { %346 = vrot.lane.b32.xlu1 %v1355_v28, %s1033_s29 }
  0x55   :  { %342 = vrot.lane.b32.xlu0 %v1332_v21, %s1033_s29 }
  0x56   :  { %320 = vrot.lane.b32.xlu1 %v1392_v22, %s1032_s28 }
  0x59   :  { %322 = vrot.lane.b32.xlu0 %v1402_v10, %s1032_s28 }
  0x5a   :  { %348 = vrot.lane.b32.xlu1 %v1372_v59, %s1033_s29 }
  0x5d   :  { %324 = vrot.lane.b32.xlu0 %v1406_v56, %s1032_s28 }
  0x5e   :  { %350 = vrot.lane.b32.xlu1 %v1385_v37, %s1033_s29 }
  0x61   :  { %354 = vrot.lane.b32.xlu0 %v1402_v10, %s1033_s29 }
  0x62   :  { %352 = vrot.lane.b32.xlu1 %v1392_v22, %s1033_s29 }
  0x66   :  { %356 = vrot.lane.b32.xlu1 %v1406_v56, %s1033_s29 }
  0xa4   :  { %v281_v45 = vpop.permute.xlu0 %280 }
  0xa5   :  { %v303_v39 = vadd.f32 %v281_v45, %v1305_v30 }
  0xa6   :  { %v279_v49 = vpop.permute.xlu1 %278 }
  0xa7   :  { %v302_v38 = vadd.f32 %v279_v49, %v1332_v21 }
  0xab   :  { %v283_v53 = vpop.permute.xlu0 %282 }
  0xac   :  { %v304_v52 = vadd.f32 %v283_v53, %v1355_v28 }
  0xaf   :  { %v313_v33 = vpop.permute.xlu0 %312 }
  0xb0   :  { %v285_v35 = vpop.permute.xlu1 %284  ;;  %v335_v63 = vadd.f32 %v313_v33, %v303_v39 }
  0xb1   :  { %v305_v55 = vadd.f32 %v285_v35, %v1372_v59 }
  0xb3   :  { %v315_v11 = vpop.permute.xlu0 %314 }
  0xb4   :  { %v287_v15 = vpop.permute.xlu1 %286  ;;  %v336_v32 = vadd.f32 %v315_v11, %v304_v52 }
  0xb5   :  { %v306_v19 = vadd.f32 %v287_v15, %v1385_v37 }
  0xb7   :  { %v311_v40 = vpop.permute.xlu0 %310 }
  0xb8   :  { %v289_v23 = vpop.permute.xlu1 %288  ;;  %v334_v57 = vadd.f32 %v311_v40, %v302_v38 }
  0xbb   :  { %v345_v58 = vpop.permute.xlu0 %344 }
  0xbc   :  { %v317_v3 = vpop.permute.xlu1 %316  ;;  %v367_v34 = vadd.f32 %v345_v58, %v335_v63  ;;  %v307_v63 = vadd.f32 %v289_v23, %v1392_v22 }
  0xbd   :  { %v337_v48 = vadd.f32 %v317_v3, %v305_v55 }
  0xbe   :  { %v375_v30 = vmul.f32 0.0026041667, %v367_v34 }
  0xbf   :  { %v319_v51 = vpop.permute.xlu0 %318 }
  0xc0   :  { %v291_v17 = vpop.permute.xlu1 %290  ;;  %v338_v21 = vadd.f32 %v319_v51, %v306_v19  ;;  %v401_v52 = vrot.slane %v375_v30, 7  ;;  %v496_v30 = vld [vmem:[%s1661_s3] sm:$0xff] }
  0xc1   :  { %v308_v28 = vadd.f32 %v291_v17, %v1402_v10  ;;  %941 = vmatpush3.msra.mxu1 %v496_v30 }
  0xc3   :  { %v293_v62 = vpop.permute.xlu0 %292 }
  0xc4   :  { %v347_v50 = vpop.permute.xlu1 %346 }
  0xc5   :  { %v368_v26 = vadd.f32 %v347_v50, %v336_v32 }
  0xc7   :  { %v343_v43 = vpop.permute.xlu0 %342  ;;  %v376_v53 = vmul.f32 0.0026041667, %v368_v26 }
  0xc8   :  { %v321_v61 = vpop.permute.xlu1 %320  ;;  %v366_v42 = vadd.f32 %v343_v43, %v334_v57 }
  0xc9   :  { %v339_v32 = vadd.f32 %v321_v61, %v307_v63 }
  0xca   :  { %v374_v39 = vmul.f32 0.0026041667, %v366_v42 }
  0xcb   :  { %v323_v31 = vpop.permute.xlu0 %322 }
  0xcc   :  { %v349_v20 = vpop.permute.xlu1 %348  ;;  %v340_v43 = vadd.f32 %v323_v31, %v308_v28  ;;  %v403_v38 = vsel %vm402_vm1, %v401_v52, %v374_v39 }
  0xcd   :  { %v369_v45 = vadd.f32 %v349_v20, %v337_v48  ;;  %v404_v20 = vrot.slane %v376_v53, 6  ;;  %v309_v48 = vadd.f32 %v293_v62, %v1406_v56  ;;  %v920_v53 = vld [vmem:[%s1662_s4] ss:$0 sm:$0xff] }
  0xcf   :  { %v325_v49 = vpop.permute.xlu0 %324  ;;  %v377_v55 = vmul.f32 0.0026041667, %v369_v45  ;;  %v406_v10 = vsel %vm405_vm2, %v404_v20, %v403_v38  ;;  %v918_v45 = vld [vmem:[%s1660_s2] ss:$0 sm:$0xff]  ;;  %s1036_s2 = smov [#allocation5]  }
  0xd0   :  { %v351_v59 = vpop.permute.xlu1 %350  ;;  %v341_v33 = vadd.f32 %v325_v49, %v309_v48  ;;  %s893_s3 = sshll.u32 %s1036_s2, 4  ;;  %s894_s3 = int_to_ptr.vmem [resolvable:$true] %s893_s3 }
  0xd1   :  { %v370_v57 = vadd.f32 %v351_v59, %v338_v21  ;;  %v407_v37 = vrot.slane %v377_v55, 5  ;;  %s982_s4 = scalar_lea.vmem %s894_s3, 128  ;;  %p987_p6 = scmp.lt.s32.totalorder %s894_s3, %s894_s3 }
  0xd2   :  { %p983_p5 = scmp.ne.s32.totalorder %s894_s3, %s982_s4  ;;  %p988_p7 = scmp.lt.s32.totalorder %s982_s4, %s982_s4 }
  0xd3   :  { %v378_v50 = vmul.f32 0.0026041667, %v370_v57  ;;  %v355_v34 = vpop.permute.xlu0 %354  ;;  %v409_v15 = vsel %vm408_vm3, %v407_v37, %v406_v10 }
  0xd4   :  { %v353_v19 = vpop.permute.xlu1 %352  ;;  %v372_v42 = vadd.f32 %v355_v34, %v340_v43  ;;  %p989_p8 = por %p988_p7, %p987_p6 }
  0xd5   :  { %v371_v26 = vadd.f32 %v353_v19, %v339_v32  ;;  %v410_v35 = vrot.slane %v378_v50, 4 }
  0xd6   :  { %v380_v22 = vmul.f32 0.0026041667, %v372_v42  ;;  %p990_p9 = pnand %p989_p8, %p983_p5 }
  0xd7   :  { %v379_v11 = vmul.f32 0.0026041667, %v371_v26  ;;  %v412_v58 = vsel %vm411_vm4, %v410_v35, %v409_v15 }
  0xd8   :  { %v416_v31 = vrot.slane %v380_v22, 2  ;;  %v357_v61 = vpop.permute.xlu1 %356 }
  0xd9   :  { %v413_v40 = vrot.slane %v379_v11, 3  ;;  %v373_v23 = vadd.f32 %v357_v61, %v341_v33 }
  0xdb   :  { %v415_v3 = vsel %vm414_vm5, %v413_v40, %v412_v58  ;;  %v381_v51 = vmul.f32 0.0026041667, %v373_v23 }
  0xdc   :  { %v418_v56 = vsel %vm417_vm6, %v416_v31, %v415_v3 }
  0xdd   :  { %v419_v17 = vrot.slane %v381_v51, 1 }
  0xdf   :  { %v421_v62 = vsel %vm420_vm7, %v419_v17, %v418_v56 }
  0xe0   :  { %938 = vmatmul.mubr.msk.f32.vlgmr.msra.gmra.mxu0 %vm422_vm8, %v421_v62 }
 0x1a0   :  { %v491_v21 = vpop.f32.mrf.mxu0 }
 0x1a1   :  { %v492_v39 = vadd.f32 %v918_v45, %v491_v21 }
 0x1a2   :  { %v939_v49 = vpop.f32.mrf.mxu0 }
 0x1a3   :  { %956 = vtanh.f32 %v492_v39 }
 0x1b0   :  { %v957_v28 = vpop.eup %956 }
 0x1b1   :  { %943 = vmatmul.mubr.msk.f32.vlgmr.msra.gmra.mxu1 %vm504_vm9, %v957_v28 }
 0x271   :  { %v574_v59 = vpop.f32.mrf.mxu1 }
 0x272   :  { %v575_v63 = vadd.f32 %v920_v53, %v574_v59 }
 0x273   :  { %v944_v52 = vpop.f32.mrf.mxu1 }
 0x274   :  { %v578_v55 = vsel %vm422_vm8, %v575_v63, -inf }
 0x275   :  { %579 = vmax.xlane.f32.xlu0 %v578_v55 }
 0x2fe   :  { %v580_v57 = vpop.xlane.xlu0 %579 }
 0x2ff   :  { %v581_v43 = vsub.f32 %v575_v63, %v580_v57 }
 0x301   :  { %v582_v32 = vmul.f32 1.442695, %v581_v43 }
 0x303   :  { %958 = vpow2.f32 %v582_v32 }
 0x310   :  { %v959_v38 = vpop.eup %958 }
 0x311   :  { %v584_v50 = vsel %vm422_vm8, %v959_v38, 0.0 }
 0x312   :  { %585 = vadd.xlane.f32.xlu1 %v584_v50 }
 0x39b   :  { %v586_v34 = vpop.xlane.xlu1 %585 }
 0x39c   :  { %960 = vrcp.f32 %v586_v34 }
 0x3a9   :  { %v961_v20 = vpop.eup %960 }
 0x3aa   :  { %v588_v19 = vmul.f32 %v961_v20, %v959_v38 }
 0x3ac   :  { %594 = vrot.lane.b32.xlu1 %v588_v19, %s1032_s28  ;;  %589 = vst.msk [vmem:[#allocation5] sm:$0xff] %vm422_vm8, %v588_v19  ;;  %591 = vrot.lane.b32.xlu0 %v588_v19, %s1033_s29 }
 0x3b0   :  { %597 = vrot.lane.b32.xlu0 %v588_v19, %s1031_s0 }
 0x3b1   :  { %993 = shalt.err (!%p990_p9)
}
 0x3b2   :  { %896 = dma.vmem_to_hbm [thread:$0]  %s894_s3, 128, %s1663_s5, [#allocation4]   ;;  %v1037_v42 = vmov 1966171168   ;;  %v610_v37 = vlaneseq  ;;  %vm601_vm10 = vcmask 523264   ;;  %vm603_vm11 = vcmask 785408  }
 0x3b3   :  { %v608_v48 = vunpack.c.l.s4 %v1037_v42  ;;  %s1038_s5 = smov [#allocation6]  }
 0x3b4   :  { %v611_v10 = vshrl.u32 %v610_v37, 7  ;;  %s902_s21 = sshll.u32 %s1038_s5, 4  ;;  %s903_s21 = int_to_ptr.vmem [resolvable:$true] %s902_s21 }
 0x3b5   :  { %v609_v26 = vunpack.c.0.s8 %v608_v48  ;;  %s1002_s22 = scalar_lea.vmem %s903_s21, 12288  ;;  %p1007_p11 = scmp.lt.s32.totalorder %s903_s21, %s903_s21 }
 0x3b6   :  { %v657_v58 = vsub.s32 0, %v611_v10  ;;  %p1003_p10 = scmp.ne.s32.totalorder %s903_s21, %s1002_s22  ;;  %p1008_p12 = scmp.lt.s32.totalorder %s1002_s22, %s1002_s22 }
 0x3b7   :  { %v612_v11 = vsub.s32 %v609_v26, %v611_v10  ;;  %v1809_v26 = vld [vmem:[#allocation13_spill] sm:$0xff]  ;;  %v1810_v10 = vld [vmem:[#allocation14_spill] sm:$0xff] }
 0x3b8   :  { %p1009_p13 = por %p1008_p12, %p1007_p11 }
 0x3ba   :  { %p1010_p0 = pnand %p1009_p13, %p1003_p10 }
 0x41e   :  { %v592_v35 = vpop.permute.xlu0 %591  ;;  %v595_v22 = vpop.permute.xlu1 %594 }
 0x41f   :  { %v600_v33 = vsel %vm422_vm8, %v588_v19, %v592_v35  ;;  %v1812_v35 = vld [vmem:[#allocation20_spill] sm:$0xff] }
 0x420   :  { %v602_v31 = vsel %vm601_vm10, %v600_v33, %v595_v22  ;;  %v1813_v33 = vld [vmem:[#allocation25_spill] sm:$0xff] }
 0x422   :  { %v598_v61 = vpop.permute.xlu0 %597 }
 0x423   :  { %v604_v15 = vsel %vm603_vm11, %v602_v31, %v598_v61  ;;  %v1814_v31 = vld [vmem:[#allocation27_spill] sm:$0xff] }
 0x424   :  { %v606_v40 = vcombine.high %v604_v15, %v604_v15  ;;  %v613_v23 = vrot.slane %v604_v15, %v612_v11  ;;  %v1815_v15 = vld [vmem:[#allocation34_spill] sm:$0xff] }
 0x426   :  { %v620_v3 = vrot.slane %v606_v40, %v612_v11  ;;  %v621_v51 = vcombine.high %v613_v23, %v613_v23  ;;  %v629_v56 = vrot.slane %v613_v23, %v612_v11  ;;  %v1816_v23 = vld [vmem:[#allocation36_spill] sm:$0xff] }
 0x428   :  { %v622_v17 = vcombine.high %v620_v3, %v620_v3  ;;  %v636_v62 = vrot.slane %v620_v3, %v612_v11  ;;  %v643_v30 = vrot.slane %v621_v51, %v612_v11  ;;  %v651_v45 = vcombine.high %v629_v56, %v629_v56  ;;  %v1817_v3 = vld [vmem:[#allocation45_spill] sm:$0xff] }
 0x429   :  { %v658_v21 = vrot.slane %v629_v56, %v657_v58  ;;  %v1818_v56 = vld [vmem:[#allocation15_spill] sm:$0xff] }
 0x42a   :  { %v650_v39 = vrot.slane %v622_v17, %v612_v11  ;;  %v652_v49 = vcombine.high %v636_v62, %v636_v62  ;;  %v653_v28 = vcombine.high %v643_v30, %v643_v30  ;;  %v662_v53 = vrot.slane %v643_v30, %v657_v58 }
 0x42b   :  { %v1472_v59 = vrot.slane %v651_v45, %v657_v58  ;;  %v1474_v63 = vrot.slane %v636_v62, %v657_v58  ;;  %v695_v52 = vmul.f32 %v658_v21, %v1093_v7  ;;  %v696_v55 = vmul.f32 %v658_v21, %v1095_v8  ;;  %v1819_v62 = vld [vmem:[#allocation16_spill] sm:$0xff]  ;;  %v1820_v45 = vld [vmem:[#allocation17_spill] sm:$0xff] }
 0x42c   :  { %v654_v57 = vcombine.high %v650_v39, %v650_v39  ;;  %v1478_v43 = vrot.slane %v653_v28, %v657_v58  ;;  %v1480_v32 = vrot.slane %v650_v39, %v657_v58  ;;  %v1482_v38 = vrot.slane %v652_v49, %v657_v58  ;;  %v1821_v39 = vld [vmem:[#allocation19_spill] sm:$0xff]  ;;  %v1822_v28 = vld [vmem:[#allocation21_spill] sm:$0xff] }
 0x42d   :  { %v697_v50 = vmul.f32 %v658_v21, %v1097_v9  ;;  %v698_v34 = vmul.f32 %v658_v21, %v1104_v13  ;;  %v699_v20 = vmul.f32 %v658_v21, %v1109_v16  ;;  %v700_v19 = vmul.f32 %v658_v21, %v1124_v25  ;;  %791 = vst [vmem:[#allocation6] sm:$0xff] %v695_v52 }
 0x42e   :  { %792 = vst [vmem:[#allocation6 + $0x8] sm:$0xff] %v696_v55  ;;  %v1488_v7 = vrot.slane %v654_v57, %v657_v58  ;;  %v701_v8 = vmul.f32 %v658_v21, %v1131_v29  ;;  %v702_v42 = vmul.f32 %v658_v21, %v1150_v41  ;;  %v703_v48 = vmul.f32 %v658_v21, %v1159_v46  ;;  %v1824_v55 = vld [vmem:[#allocation29_spill] sm:$0xff] }
 0x42f   :  { %v704_v37 = vmul.f32 %v658_v21, %v1180_v60  ;;  %v705_v9 = vmul.f32 %v658_v21, %v1189_v6  ;;  %v706_v13 = vmul.f32 %v658_v21, %v1213_v47  ;;  %v707_v16 = vmul.f32 %v662_v53, %v1080_v0  ;;  %793 = vst [vmem:[#allocation6 + $0x10] sm:$0xff] %v697_v50  ;;  %v1825_v50 = vld [vmem:[#allocation35_spill] sm:$0xff] }
 0x430   :  { %794 = vst [vmem:[#allocation6 + $0x18] sm:$0xff] %v698_v34  ;;  %795 = vst [vmem:[#allocation6 + $0x20] sm:$0xff] %v699_v20  ;;  %v708_v25 = vmul.f32 %v662_v53, %v1082_v1  ;;  %v709_v29 = vmul.f32 %v662_v53, %v1084_v2  ;;  %v710_v41 = vmul.f32 %v662_v53, %v1088_v4  ;;  %v1826_v20 = vld [vmem:[#allocation39_spill] sm:$0xff] }
 0x431   :  { %796 = vst [vmem:[#allocation6 + $0x28] sm:$0xff] %v700_v19  ;;  %v711_v46 = vmul.f32 %v662_v53, %v1090_v5  ;;  %797 = vst [vmem:[#allocation6 + $0x30] sm:$0xff] %v701_v8  ;;  %v712_v60 = vmul.f32 %v662_v53, %v1102_v12  ;;  %v713_v6 = vmul.f32 %v662_v53, %v1106_v14  ;;  %v1807_v12 = vld [vmem:[#allocation11_spill] sm:$0xff]  ;;  %v1827_v8 = vld [vmem:[#allocation46_spill] sm:$0xff] }
 0x432   :  { %798 = vst [vmem:[#allocation6 + $0x38] sm:$0xff] %v702_v42  ;;  %799 = vst [vmem:[#allocation6 + $0x40] sm:$0xff] %v703_v48  ;;  %v714_v0 = vmul.f32 %v662_v53, %v1122_v24  ;;  %v715_v47 = vmul.f32 %v662_v53, %v1128_v27  ;;  %v716_v1 = vmul.f32 %v662_v53, %v1143_v36  ;;  %v1808_v24 = vld [vmem:[#allocation12_spill] sm:$0xff]  ;;  %v1828_v48 = vld [vmem:[#allocation47_spill] sm:$0xff] }
 0x433   :  { %800 = vst [vmem:[#allocation6 + $0x48] sm:$0xff] %v704_v37  ;;  %801 = vst [vmem:[#allocation6 + $0x50] sm:$0xff] %v705_v9  ;;  %v717_v2 = vmul.f32 %v662_v53, %v1156_v44  ;;  %v718_v4 = vmul.f32 %v662_v53, %v1172_v54  ;;  %v719_v5 = vmul.f32 %v1472_v59, %v1112_v18  ;;  %v1811_v18 = vld [vmem:[#allocation18_spill] sm:$0xff]  ;;  %v1829_v9 = vld [vmem:[#allocation57_spill] sm:$0xff] }
 0x434   :  { %802 = vst [vmem:[#allocation6 + $0x58] sm:$0xff] %v706_v13  ;;  %803 = vst [vmem:[#allocation6 + $0x60] sm:$0xff] %v707_v16  ;;  %v720_v14 = vmul.f32 %v1472_v59, %v1807_v12  ;;  %v721_v27 = vmul.f32 %v1472_v59, %v1808_v24  ;;  %v722_v36 = vmul.f32 %v1472_v59, %v1809_v26  ;;  %v1830_v16 = vld [vmem:[#allocation22_spill] sm:$0xff]  ;;  %v1837_v12 = vld [vmem:[#allocation48_spill] sm:$0xff] }
 0x435   :  { %804 = vst [vmem:[#allocation6 + $0x68] sm:$0xff] %v708_v25  ;;  %805 = vst [vmem:[#allocation6 + $0x70] sm:$0xff] %v709_v29  ;;  %v723_v44 = vmul.f32 %v1472_v59, %v1810_v10  ;;  %v724_v54 = vmul.f32 %v1472_v59, %v1811_v18  ;;  %v725_v22 = vmul.f32 %v1472_v59, %v1812_v35  ;;  %v1831_v29 = vld [vmem:[#allocation23_spill] sm:$0xff]  ;;  %v1839_v26 = vld [vmem:[#allocation58_spill] sm:$0xff] }
 0x436   :  { %806 = vst [vmem:[#allocation6 + $0x78] sm:$0xff] %v710_v41  ;;  %807 = vst [vmem:[#allocation6 + $0x80] sm:$0xff] %v711_v46  ;;  %v726_v11 = vmul.f32 %v1472_v59, %v1813_v33  ;;  %v727_v61 = vmul.f32 %v1472_v59, %v1814_v31  ;;  %v728_v40 = vmul.f32 %v1472_v59, %v1815_v15  ;;  %v1832_v46 = vld [vmem:[#allocation24_spill] sm:$0xff]  ;;  %v1838_v24 = vld [vmem:[#allocation51_spill] sm:$0xff] }
 0x437   :  { %808 = vst [vmem:[#allocation6 + $0x88] sm:$0xff] %v712_v60  ;;  %809 = vst [vmem:[#allocation6 + $0x90] sm:$0xff] %v713_v6  ;;  %v729_v58 = vmul.f32 %v1472_v59, %v1816_v23  ;;  %v730_v51 = vmul.f32 %v1472_v59, %v1817_v3  ;;  %v731_v17 = vmul.f32 %v1478_v43, %v1818_v56  ;;  %v1823_v59 = vld [vmem:[#allocation26_spill] sm:$0xff]  ;;  %v1833_v6 = vld [vmem:[#allocation28_spill] sm:$0xff] }
 0x438   :  { %810 = vst [vmem:[#allocation6 + $0x98] sm:$0xff] %v714_v0  ;;  %811 = vst [vmem:[#allocation6 + $0xa0] sm:$0xff] %v715_v47  ;;  %v732_v30 = vmul.f32 %v1478_v43, %v1819_v62  ;;  %v733_v21 = vmul.f32 %v1478_v43, %v1820_v45  ;;  %v734_v49 = vmul.f32 %v1478_v43, %v1821_v39  ;;  %v1834_v47 = vld [vmem:[#allocation32_spill] sm:$0xff]  ;;  %v1840_v10 = vld [vmem:[#allocation62_spill] sm:$0xff] }
 0x439   :  { %812 = vst [vmem:[#allocation6 + $0xa8] sm:$0xff] %v716_v1  ;;  %813 = vst [vmem:[#allocation6 + $0xb0] sm:$0xff] %v717_v2  ;;  %v735_v53 = vmul.f32 %v1478_v43, %v1822_v28  ;;  %v736_v52 = vmul.f32 %v1478_v43, %v1823_v59  ;;  %v737_v57 = vmul.f32 %v1478_v43, %v1824_v55  ;;  %v1841_v18 = vld [vmem:[#allocation66_spill] sm:$0xff]  ;;  %v1843_v33 = vld [vmem:[#allocation31_spill] sm:$0xff] }
 0x43a   :  { %814 = vst [vmem:[#allocation6 + $0xb8] sm:$0xff] %v718_v4  ;;  %815 = vst [vmem:[#allocation6 + $0xc0] sm:$0xff] %v719_v5  ;;  %v738_v34 = vmul.f32 %v1478_v43, %v1825_v50  ;;  %v739_v19 = vmul.f32 %v1478_v43, %v1826_v20  ;;  %v740_v42 = vmul.f32 %v1478_v43, %v1827_v8  ;;  %v1836_v4 = vld [vmem:[#allocation42_spill] sm:$0xff]  ;;  %v1844_v31 = vld [vmem:[#allocation33_spill] sm:$0xff] }
 0x43b   :  { %816 = vst [vmem:[#allocation6 + $0xc8] sm:$0xff] %v720_v14  ;;  %817 = vst [vmem:[#allocation6 + $0xd0] sm:$0xff] %v721_v27  ;;  %v741_v37 = vmul.f32 %v1478_v43, %v1828_v48  ;;  %v742_v13 = vmul.f32 %v1478_v43, %v1829_v9  ;;  %v743_v25 = vmul.f32 %v1474_v63, %v1830_v16  ;;  %v1835_v43 = vld [vmem:[#allocation37_spill] sm:$0xff]  ;;  %v1842_v35 = vld [vmem:[#allocation30_spill] sm:$0xff] }
 0x43c   :  { %818 = vst [vmem:[#allocation6 + $0xd8] sm:$0xff] %v722_v36  ;;  %819 = vst [vmem:[#allocation6 + $0xe0] sm:$0xff] %v723_v44  ;;  %v744_v41 = vmul.f32 %v1474_v63, %v1831_v29  ;;  %v745_v60 = vmul.f32 %v1474_v63, %v1832_v46  ;;  %v746_v0 = vmul.f32 %v1474_v63, %v1833_v6  ;;  %v1845_v15 = vld [vmem:[#allocation38_spill] sm:$0xff]  ;;  %v1846_v23 = vld [vmem:[#allocation43_spill] sm:$0xff] }
 0x43d   :  { %820 = vst [vmem:[#allocation6 + $0xe8] sm:$0xff] %v724_v54  ;;  %821 = vst [vmem:[#allocation6 + $0xf0] sm:$0xff] %v725_v22  ;;  %v747_v1 = vmul.f32 %v1474_v63, %v1834_v47  ;;  %v748_v2 = vmul.f32 %v1474_v63, %v1835_v43  ;;  %v749_v5 = vmul.f32 %v1474_v63, %v1836_v4  ;;  %v1860_v9 = vld [vmem:[#allocation64_spill] sm:$0xff]  ;;  %v1862_v29 = vld [vmem:[#allocation71_spill] sm:$0xff] }
 0x43e   :  { %822 = vst [vmem:[#allocation6 + $0xf8] sm:$0xff] %v726_v11  ;;  %823 = vst [vmem:[#allocation6 + $0x100] sm:$0xff] %v727_v61  ;;  %v750_v14 = vmul.f32 %v1474_v63, %v1837_v12  ;;  %v751_v27 = vmul.f32 %v1474_v63, %v1838_v24  ;;  %v752_v36 = vmul.f32 %v1474_v63, %v1839_v26  ;;  %v1861_v16 = vld [vmem:[#allocation68_spill] sm:$0xff]  ;;  %v1863_v46 = vld [vmem:[#allocation74_spill] sm:$0xff] }
 0x43f   :  { %824 = vst [vmem:[#allocation6 + $0x108] sm:$0xff] %v728_v40  ;;  %825 = vst [vmem:[#allocation6 + $0x110] sm:$0xff] %v729_v58  ;;  %v753_v44 = vmul.f32 %v1474_v63, %v1840_v10  ;;  %v754_v54 = vmul.f32 %v1474_v63, %v1841_v18  ;;  %v755_v22 = vmul.f32 %v1480_v32, %v1842_v35  ;;  %v1847_v63 = vld [vmem:[#allocation49_spill] sm:$0xff]  ;;  %v1864_v6 = vld [vmem:[#allocation76_spill] sm:$0xff] }
 0x440   :  { %826 = vst [vmem:[#allocation6 + $0x118] sm:$0xff] %v730_v51  ;;  %827 = vst [vmem:[#allocation6 + $0x120] sm:$0xff] %v731_v17  ;;  %v756_v11 = vmul.f32 %v1480_v32, %v1843_v33  ;;  %v757_v61 = vmul.f32 %v1480_v32, %v1844_v31  ;;  %v758_v40 = vmul.f32 %v1480_v32, %v1845_v15  ;;  %v1848_v51 = vld [vmem:[#allocation54_spill] sm:$0xff]  ;;  %v1849_v17 = vld [vmem:[#allocation59_spill] sm:$0xff] }
 0x441   :  { %828 = vst [vmem:[#allocation6 + $0x128] sm:$0xff] %v732_v30  ;;  %829 = vst [vmem:[#allocation6 + $0x130] sm:$0xff] %v733_v21  ;;  %v759_v58 = vmul.f32 %v1480_v32, %v1846_v23  ;;  %v760_v3 = vmul.f32 %v1480_v32, %v1847_v63  ;;  %v761_v56 = vmul.f32 %v1480_v32, %v1848_v51  ;;  %v1850_v30 = vld [vmem:[#allocation63_spill] sm:$0xff]  ;;  %v1865_v47 = vld [vmem:[#allocation78_spill] sm:$0xff] }
 0x442   :  { %830 = vst [vmem:[#allocation6 + $0x138] sm:$0xff] %v734_v49  ;;  %831 = vst [vmem:[#allocation6 + $0x140] sm:$0xff] %v735_v53  ;;  %v762_v62 = vmul.f32 %v1480_v32, %v1849_v17  ;;  %v763_v45 = vmul.f32 %v1480_v32, %v1850_v30  ;;  %v1851_v21 = vld [vmem:[#allocation67_spill] sm:$0xff]  ;;  %v1852_v49 = vld [vmem:[#allocation70_spill] sm:$0xff] }
 0x443   :  { %832 = vst [vmem:[#allocation6 + $0x148] sm:$0xff] %v736_v52  ;;  %833 = vst [vmem:[#allocation6 + $0x150] sm:$0xff] %v737_v57  ;;  %v764_v39 = vmul.f32 %v1480_v32, %v1851_v21  ;;  %v765_v28 = vmul.f32 %v1480_v32, %v1852_v49  ;;  %v1853_v53 = vld [vmem:[#allocation73_spill] sm:$0xff]  ;;  %v1854_v52 = vld [vmem:[#allocation40_spill] sm:$0xff] }
 0x444   :  { %834 = vst [vmem:[#allocation6 + $0x158] sm:$0xff] %v738_v34  ;;  %835 = vst [vmem:[#allocation6 + $0x160] sm:$0xff] %v739_v19  ;;  %v766_v59 = vmul.f32 %v1480_v32, %v1853_v53  ;;  %v767_v55 = vmul.f32 %v1482_v38, %v1854_v52  ;;  %v1855_v57 = vld [vmem:[#allocation41_spill] sm:$0xff]  ;;  %v1856_v34 = vld [vmem:[#allocation44_spill] sm:$0xff] }
 0x445   :  { %836 = vst [vmem:[#allocation6 + $0x168] sm:$0xff] %v740_v42  ;;  %837 = vst [vmem:[#allocation6 + $0x170] sm:$0xff] %v741_v37  ;;  %v768_v50 = vmul.f32 %v1482_v38, %v1855_v57  ;;  %v769_v20 = vmul.f32 %v1482_v38, %v1856_v34  ;;  %v1857_v19 = vld [vmem:[#allocation50_spill] sm:$0xff]  ;;  %v1858_v42 = vld [vmem:[#allocation55_spill] sm:$0xff] }
 0x446   :  { %838 = vst [vmem:[#allocation6 + $0x178] sm:$0xff] %v742_v13  ;;  %839 = vst [vmem:[#allocation6 + $0x180] sm:$0xff] %v743_v25  ;;  %v770_v8 = vmul.f32 %v1482_v38, %v1857_v19  ;;  %v771_v48 = vmul.f32 %v1482_v38, %v1858_v42  ;;  %v1859_v32 = vld [vmem:[#allocation60_spill] sm:$0xff]  ;;  %v773_v13 = vmul.f32 %v1482_v38, %v1860_v9  ;;  %v1867_v4 = vld [vmem:[#allocation53_spill] sm:$0xff] }
 0x447   :  { %840 = vst [vmem:[#allocation6 + $0x188] sm:$0xff] %v744_v41  ;;  %841 = vst [vmem:[#allocation6 + $0x190] sm:$0xff] %v745_v60  ;;  %v772_v37 = vmul.f32 %v1482_v38, %v1859_v32  ;;  %v774_v25 = vmul.f32 %v1482_v38, %v1861_v16  ;;  %v775_v41 = vmul.f32 %v1482_v38, %v1862_v29  ;;  %v1866_v43 = vld [vmem:[#allocation52_spill] sm:$0xff]  ;;  %v1869_v24 = vld [vmem:[#allocation61_spill] sm:$0xff] }
 0x448   :  { %842 = vst [vmem:[#allocation6 + $0x198] sm:$0xff] %v746_v0  ;;  %843 = vst [vmem:[#allocation6 + $0x1a0] sm:$0xff] %v747_v1  ;;  %v776_v60 = vmul.f32 %v1482_v38, %v1863_v46  ;;  %v777_v0 = vmul.f32 %v1482_v38, %v1864_v6  ;;  %v778_v1 = vmul.f32 %v1482_v38, %v1865_v47  ;;  %v1868_v12 = vld [vmem:[#allocation56_spill] sm:$0xff]  ;;  %v1870_v26 = vld [vmem:[#allocation65_spill] sm:$0xff] }
 0x449   :  { %844 = vst [vmem:[#allocation6 + $0x1a8] sm:$0xff] %v748_v2  ;;  %845 = vst [vmem:[#allocation6 + $0x1b0] sm:$0xff] %v749_v5  ;;  %v779_v2 = vmul.f32 %v1488_v7, %v1866_v43  ;;  %v780_v5 = vmul.f32 %v1488_v7, %v1867_v4  ;;  %v783_v38 = vmul.f32 %v1488_v7, %v1870_v26 }
 0x44a   :  { %846 = vst [vmem:[#allocation6 + $0x1b8] sm:$0xff] %v750_v14  ;;  %847 = vst [vmem:[#allocation6 + $0x1c0] sm:$0xff] %v751_v27  ;;  %v781_v14 = vmul.f32 %v1488_v7, %v1868_v12  ;;  %v782_v27 = vmul.f32 %v1488_v7, %v1869_v24 }
 0x44b   :  { %848 = vst [vmem:[#allocation6 + $0x1c8] sm:$0xff] %v752_v36  ;;  %849 = vst [vmem:[#allocation6 + $0x1d0] sm:$0xff] %v753_v44  ;;  %v1871_v36 = vld [vmem:[#allocation69_spill] sm:$0xff]  ;;  %v1872_v44 = vld [vmem:[#allocation72_spill] sm:$0xff] }
 0x44c   :  { %850 = vst [vmem:[#allocation6 + $0x1d8] sm:$0xff] %v754_v54  ;;  %851 = vst [vmem:[#allocation6 + $0x1e0] sm:$0xff] %v755_v22  ;;  %v784_v10 = vmul.f32 %v1488_v7, %v1871_v36  ;;  %v785_v18 = vmul.f32 %v1488_v7, %v1872_v44  ;;  %v1873_v54 = vld [vmem:[#allocation75_spill] sm:$0xff]  ;;  %v1874_v22 = vld [vmem:[#allocation77_spill] sm:$0xff] }
 0x44d   :  { %852 = vst [vmem:[#allocation6 + $0x1e8] sm:$0xff] %v756_v11  ;;  %853 = vst [vmem:[#allocation6 + $0x1f0] sm:$0xff] %v757_v61  ;;  %v786_v35 = vmul.f32 %v1488_v7, %v1873_v54  ;;  %v787_v33 = vmul.f32 %v1488_v7, %v1874_v22  ;;  %v1875_v11 = vld [vmem:[#allocation79_spill] sm:$0xff]  ;;  %v1876_v61 = vld [vmem:[#allocation80_spill] sm:$0xff] }
 0x44e   :  { %854 = vst [vmem:[#allocation6 + $0x1f8] sm:$0xff] %v758_v40  ;;  %855 = vst [vmem:[#allocation6 + $0x200] sm:$0xff] %v759_v58  ;;  %v788_v31 = vmul.f32 %v1488_v7, %v1875_v11  ;;  %v789_v15 = vmul.f32 %v1488_v7, %v1876_v61  ;;  %v1877_v40 = vld [vmem:[#allocation81_spill] sm:$0xff] }
 0x44f   :  { %856 = vst [vmem:[#allocation6 + $0x208] sm:$0xff] %v760_v3  ;;  %857 = vst [vmem:[#allocation6 + $0x210] sm:$0xff] %v761_v56  ;;  %v790_v23 = vmul.f32 %v1488_v7, %v1877_v40 }
 0x450   :  { %858 = vst [vmem:[#allocation6 + $0x218] sm:$0xff] %v762_v62  ;;  %859 = vst [vmem:[#allocation6 + $0x220] sm:$0xff] %v763_v45 }
 0x451   :  { %860 = vst [vmem:[#allocation6 + $0x228] sm:$0xff] %v764_v39  ;;  %861 = vst [vmem:[#allocation6 + $0x230] sm:$0xff] %v765_v28 }
 0x452   :  { %862 = vst [vmem:[#allocation6 + $0x238] sm:$0xff] %v766_v59  ;;  %863 = vst [vmem:[#allocation6 + $0x240] sm:$0xff] %v767_v55 }
 0x453   :  { %864 = vst [vmem:[#allocation6 + $0x248] sm:$0xff] %v768_v50  ;;  %865 = vst [vmem:[#allocation6 + $0x250] sm:$0xff] %v769_v20 }
 0x454   :  { %866 = vst [vmem:[#allocation6 + $0x258] sm:$0xff] %v770_v8  ;;  %867 = vst [vmem:[#allocation6 + $0x260] sm:$0xff] %v771_v48 }
 0x455   :  { %868 = vst [vmem:[#allocation6 + $0x268] sm:$0xff] %v772_v37  ;;  %869 = vst [vmem:[#allocation6 + $0x270] sm:$0xff] %v773_v13 }
 0x456   :  { %870 = vst [vmem:[#allocation6 + $0x278] sm:$0xff] %v774_v25  ;;  %871 = vst [vmem:[#allocation6 + $0x280] sm:$0xff] %v775_v41 }
 0x457   :  { %872 = vst [vmem:[#allocation6 + $0x288] sm:$0xff] %v776_v60  ;;  %873 = vst [vmem:[#allocation6 + $0x290] sm:$0xff] %v777_v0 }
 0x458   :  { %874 = vst [vmem:[#allocation6 + $0x298] sm:$0xff] %v778_v1  ;;  %875 = vst [vmem:[#allocation6 + $0x2a0] sm:$0xff] %v779_v2 }
 0x459   :  { %876 = vst [vmem:[#allocation6 + $0x2a8] sm:$0xff] %v780_v5  ;;  %877 = vst [vmem:[#allocation6 + $0x2b0] sm:$0xff] %v781_v14 }
 0x45a   :  { %878 = vst [vmem:[#allocation6 + $0x2b8] sm:$0xff] %v782_v27  ;;  %879 = vst [vmem:[#allocation6 + $0x2c0] sm:$0xff] %v783_v38 }
 0x45b   :  { %880 = vst [vmem:[#allocation6 + $0x2c8] sm:$0xff] %v784_v10  ;;  %881 = vst [vmem:[#allocation6 + $0x2d0] sm:$0xff] %v785_v18 }
 0x45c   :  { %882 = vst [vmem:[#allocation6 + $0x2d8] sm:$0xff] %v786_v35  ;;  %883 = vst [vmem:[#allocation6 + $0x2e0] sm:$0xff] %v787_v33 }
 0x45d   :  { %884 = vst [vmem:[#allocation6 + $0x2e8] sm:$0xff] %v788_v31  ;;  %885 = vst [vmem:[#allocation6 + $0x2f0] sm:$0xff] %v789_v15 }
 0x45e   :  { %886 = vst [vmem:[#allocation6 + $0x2f8] sm:$0xff] %v790_v23 }
 0x45f   :  { %1013 = shalt.err (!%p1010_p0)
}
 0x460   :  { %908 = dma.vmem_to_hbm [thread:$0]  %s903_s21, 12288, %s1664_s6, [#allocation7], %s1029_s24, %s1029_s24, %s1030_s25  }
 0x461   :  { %1024 = dma.done.wait [#allocation4], 128  }
 0x462   :  { %1025 = vsyncadd [#allocation4], 4294967168 }
 0x463   :  { %1026 = dma.done.wait [#allocation7], 12288  }
 0x464   :  { %1027 = vsyncadd [#allocation7], 4294955008 }
 0x465   :  { %915 = vsyncpa [#allocation3], 1 }
 0x466   :  { %916 = vsyncpa [#allocation4], 1 }
 0x467   :  { %917 = vsyncpa [#allocation7], 1 }

</bundles_post_ra>
